<compile_context>
chip_gen: v7x
topology: tpu7x:2x2x1
jax: 0.10.0
libtpu: 0.0.40
codegen_flags: <defaults>
</compile_context>

<pallas_src>
import functools

import jax
import jax.numpy as jnp
from jax import lax
from jax.experimental import pallas as pl
from jax.experimental.pallas import tpu as pltpu


# ----------------------------------------------------------------------------
# Fused kernel.
#   x_ref:      [C, TM]   bf16  decoder features (pixels on the 128-lane axis)
#   w_ref:      [10K, C]  bf16  all ten 1x1-conv heads fused into one matrix
#   b_ref:      [10K, 1]  f32   fused biases
#   gumbel_ref: [K, TM]   f32   standard Gumbel noise (Categorical sampling)
#   lnoise_ref: [3, TM]   f32   standard logistic noise = logit(U), U~U(0,1)
#   o_ref:      [3, TM]   f32   sampled RGB in [-1, 1]
# ----------------------------------------------------------------------------
def _dmll_sample_kernel(x_ref, w_ref, b_ref, gumbel_ref, lnoise_ref, o_ref, *,
                        n_mix):
    k = n_mix

    # All ten 1x1-conv heads as one MXU matmul (bf16 in, f32 accumulate).
    feats = jnp.dot(w_ref[...], x_ref[...], preferred_element_type=jnp.float32)
    feats = feats + b_ref[...]                               # [10K, TM]

    def head(i):                      # sublane-aligned static slice (K rows)
        return feats[i * k:(i + 1) * k, :]

    # --- Categorical(logits) via Gumbel-max, selection FIRST --------------
    scores = head(9) + gumbel_ref[...]                       # [K, TM]
    idx = lax.broadcasted_iota(jnp.int32, scores.shape, 0)
    max_s = jnp.max(scores, axis=0, keepdims=True)
    first = jnp.min(jnp.where(scores >= max_s, idx, k), axis=0, keepdims=True)
    sel = (idx == first).astype(jnp.float32)                 # exact one-hot

    def pick(i):                      # selected mixture's parameter, [1, TM]
        return jnp.sum(head(i) * sel, axis=0, keepdims=True)

    # Elementwise transforms commute with one-hot selection, so tanh / clamp /
    # exp / coupling run only on the selected [1, TM] rows.
    stability = -7.0
    r_mean = pick(0)
    r_scale = jnp.exp(jnp.maximum(pick(1), stability))
    g_mean = pick(2)
    g_scale = jnp.exp(jnp.maximum(pick(3), stability))
    gr_coeff = jnp.tanh(pick(4))
    b_mean = pick(5)
    b_scale = jnp.exp(jnp.maximum(pick(6), stability))
    br_coeff = jnp.tanh(pick(7))
    bg_coeff = jnp.tanh(pick(8))

    # Sampling path (targets are None): couple means on the predicted means.
    g_mean = g_mean + gr_coeff * r_mean
    b_mean = b_mean + br_coeff * r_mean + bg_coeff * g_mean

    # TransformedDistribution(Uniform, [Sigmoid.inv, Affine(mean, scale)]):
    # sample = mean + scale * logit(U); logit(U) is the precomputed noise.
    noise = lnoise_ref[...]                                  # [3, TM]
    color_r = r_mean + r_scale * noise[0:1, :]
    color_g = g_mean + g_scale * noise[1:2, :]
    color_b = b_mean + b_scale * noise[2:3, :]

    img = jnp.concatenate([color_r, color_g, color_b], axis=0)   # [3, TM]
    o_ref[...] = jnp.clip(img, -1.0, 1.0)


# ----------------------------------------------------------------------------
# Wrapper: reshape-only layout plumbing + one pallas_call.
# ----------------------------------------------------------------------------
def dmll_forward(params, dec_out, key, *, n_mixtures, row_tile=1024):
    n, c, h, w = dec_out.shape
    hw = h * w
    # Lane tile: multiple of 128, capped at row_tile; pad the pixel axis up to
    # a tile multiple (no whole-axis-in-one-block fallback -> no VMEM cliff).
    tm = min(row_tile, max(128, -(-hw // 128) * 128))
    hw_pad = -(-hw // tm) * tm

    # bf16 activations/weights into the MXU (f32 accumulation in-kernel).
    # Ideally the upstream decoder already emits bf16 so this cast is free.
    x = dec_out.astype(jnp.bfloat16).reshape(n, c, hw)
    if hw_pad != hw:
        x = jnp.pad(x, ((0, 0), (0, 0), (0, hw_pad - hw)))
    w_t = params["w"].astype(jnp.bfloat16)                   # [10K, C]
    b_col = params["b"]                                      # [10K, 1] f32

    k_g, k_l = jax.random.split(key)
    gumbel = jax.random.gumbel(k_g, (n, n_mixtures, hw_pad), jnp.float32)
    lnoise = jax.random.logistic(k_l, (n, 3, hw_pad), jnp.float32)

    kern = functools.partial(_dmll_sample_kernel, n_mix=n_mixtures)
    out = pl.pallas_call(
        kern,
        out_shape=jax.ShapeDtypeStruct((n, 3, hw_pad), jnp.float32),
        grid=(n, hw_pad // tm),
        in_specs=[
            pl.BlockSpec((None, c, tm), lambda i, j: (i, 0, j)),
            pl.BlockSpec((10 * n_mixtures, c), lambda i, j: (0, 0)),
            pl.BlockSpec((10 * n_mixtures, 1), lambda i, j: (0, 0)),
            pl.BlockSpec((None, n_mixtures, tm), lambda i, j: (i, 0, j)),
            pl.BlockSpec((None, 3, tm), lambda i, j: (i, 0, j)),
        ],
        out_specs=pl.BlockSpec((None, 3, tm), lambda i, j: (i, 0, j)),
        compiler_params=pltpu.CompilerParams(
            dimension_semantics=("parallel", "parallel")),
    )(x, w_t, b_col, gumbel, lnoise)

    if hw_pad != hw:
        out = out[:, :, :hw]
    return out.reshape(n, 3, h, w)                           # NCHW (N, 3, H, W)


# ----------------------------------------------------------------------------
# Parameter construction: ten Conv2d(channels, n_mixtures, 1) heads fused into
# one [10K, C] weight matrix + [10K, 1] bias (torch-like uniform init).
# ----------------------------------------------------------------------------
_HEADS = ("r_mean", "r_logscale", "g_mean", "g_logscale", "gr_coeff",
          "b_mean", "b_logscale", "br_coeff", "bg_coeff", "logits")


def init_dmll_params(key, channels, n_mixtures):
    bound = channels ** -0.5
    ws, bs = [], []
    for _ in _HEADS:
        key, kw, kb = jax.random.split(key, 3)
        ws.append(jax.random.uniform(kw, (n_mixtures, channels), jnp.float32,
                                     -bound, bound))
        bs.append(jax.random.uniform(kb, (n_mixtures,), jnp.float32,
                                     -bound, bound))
    return {"w": jnp.concatenate(ws, axis=0),                  # [10K, C]
            "b": jnp.concatenate(bs, axis=0).reshape(-1, 1)}   # [10K, 1]


# ----------------------------------------------------------------------------
if __name__ == "__main__":
    CHANNELS = 32
    N_MIXTURES = 8            # multiple of 8 -> sublane-aligned head slices
    N, H, W = 2, 16, 16

    root = jax.random.PRNGKey(0)
    k_params, k_x, k_noise = jax.random.split(root, 3)
    params = init_dmll_params(k_params, CHANNELS, N_MIXTURES)
    dec_out = jax.random.normal(k_x, (N, CHANNELS, H, W), jnp.float32)

    img = dmll_forward(params, dec_out, k_noise, n_mixtures=N_MIXTURES)
    img = jax.block_until_ready(img)

    assert img.shape == (N, 3, H, W), img.shape
    assert img.dtype == jnp.float32
    assert bool(jnp.all(jnp.isfinite(img)))
    assert bool(jnp.all((img >= -1.0) & (img <= 1.0)))
    print("KERNEL_OK")
</pallas_src>

<mosaic_0001>
module attributes {stable_mosaic.version = 11 : i64} {
  func.func @_dmll_sample_kernel(%arg0: i32, %arg1: i32, %arg2: memref<1x32x256xbf16, #tpu.memory_space<vmem>>, %arg3: memref<80x32xbf16, #tpu.memory_space<vmem>>, %arg4: memref<80x1xf32, #tpu.memory_space<vmem>>, %arg5: memref<1x8x256xf32, #tpu.memory_space<vmem>>, %arg6: memref<1x3x256xf32, #tpu.memory_space<vmem>>, %arg7: memref<1x3x256xf32, #tpu.memory_space<vmem>>) attributes {dimension_semantics = [#tpu.dimension_semantics<parallel>, #tpu.dimension_semantics<parallel>], iteration_bounds = array<i64: 2, 1>, scalar_prefetch = 0 : i64, scratch_operands = 0 : i64, tpu.core_type = #tpu.core_type<tc>, window_params = [{transform_indices = @transform_0, window_bounds = array<i64: 1, 32, 256>}, {pipeline_mode = #tpu.pipeline_mode<synchronous>, transform_indices = @transform_1, window_bounds = array<i64: 80, 32>}, {pipeline_mode = #tpu.pipeline_mode<synchronous>, transform_indices = @transform_2, window_bounds = array<i64: 80, 1>}, {transform_indices = @transform_3, window_bounds = array<i64: 1, 8, 256>}, {transform_indices = @transform_4, window_bounds = array<i64: 1, 3, 256>}, {transform_indices = @transform_5, window_bounds = array<i64: 1, 3, 256>}]} {
    %c0 = arith.constant 0 : index
    %c0_0 = arith.constant 0 : index
    %0 = vector.load %arg3[%c0, %c0_0] : memref<80x32xbf16, #tpu.memory_space<vmem>>, vector<80x32xbf16>
    %c0_1 = arith.constant 0 : index
    %c0_2 = arith.constant 0 : index
    %c0_3 = arith.constant 0 : index
    %1 = vector.load %arg2[%c0_1, %c0_2, %c0_3] : memref<1x32x256xbf16, #tpu.memory_space<vmem>>, vector<1x32x256xbf16>
    %2 = vector.shape_cast %1 : vector<1x32x256xbf16> to vector<32x256xbf16>
    %cst = arith.constant dense<0.000000e+00> : vector<80x256xf32>
    %3 = tpu.matmul %0, %2, %cst {dimension_numbers = #tpu.dot_dimension_numbers<[1], [0], [0], [1], [0, 0, 1, 1], [], []>} : vector<80x32xbf16>, vector<32x256xbf16>, vector<80x256xf32> -> vector<80x256xf32>
    %c0_4 = arith.constant 0 : index
    %c0_5 = arith.constant 0 : index
    %4 = vector.load %arg4[%c0_4, %c0_5] : memref<80x1xf32, #tpu.memory_space<vmem>>, vector<80x1xf32>
    %5 = vector.broadcast %4 : vector<80x1xf32> to vector<80x256xf32>
    %6 = arith.addf %3, %5 : vector<80x256xf32>
    %7 = vector.extract_strided_slice %6 {offsets = [72, 0], sizes = [8, 256], strides = [1, 1]} : vector<80x256xf32> to vector<8x256xf32>
    %c0_6 = arith.constant 0 : index
    %c0_7 = arith.constant 0 : index
    %c0_8 = arith.constant 0 : index
    %8 = vector.load %arg5[%c0_6, %c0_7, %c0_8] : memref<1x8x256xf32, #tpu.memory_space<vmem>>, vector<1x8x256xf32>
    %9 = vector.shape_cast %8 : vector<1x8x256xf32> to vector<8x256xf32>
    %10 = arith.addf %7, %9 : vector<8x256xf32>
    %11 = tpu.iota {dimensions = array<i32: 0>} : vector<8x256xi32>
    %cst_9 = arith.constant dense<0xFF800000> : vector<256xf32>
    %12 = vector.multi_reduction <maximumf>, %10, %cst_9 [0] : vector<8x256xf32> to vector<256xf32>
    %13 = vector.shape_cast %12 : vector<256xf32> to vector<1x256xf32>
    %14 = vector.broadcast %13 : vector<1x256xf32> to vector<8x256xf32>
    %15 = arith.cmpf oge, %10, %14 : vector<8x256xf32>
    %c8_i32 = arith.constant 8 : i32
    %16 = vector.broadcast %c8_i32 : i32 to vector<8x256xi32>
    %17 = arith.select %15, %11, %16 : vector<8x256xi1>, vector<8x256xi32>
    %cst_10 = arith.constant dense<2147483647> : vector<256xi32>
    %18 = vector.multi_reduction <minsi>, %17, %cst_10 [0] : vector<8x256xi32> to vector<256xi32>
    %19 = vector.shape_cast %18 : vector<256xi32> to vector<1x256xi32>
    %20 = vector.broadcast %19 : vector<1x256xi32> to vector<8x256xi32>
    %21 = arith.cmpi eq, %11, %20 : vector<8x256xi32>
    %22 = arith.extui %21 : vector<8x256xi1> to vector<8x256xi32>
    %23 = arith.sitofp %22 : vector<8x256xi32> to vector<8x256xf32>
    %24 = vector.extract_strided_slice %6 {offsets = [0, 0], sizes = [8, 256], strides = [1, 1]} : vector<80x256xf32> to vector<8x256xf32>
    %25 = arith.mulf %24, %23 : vector<8x256xf32>
    %cst_11 = arith.constant dense<0.000000e+00> : vector<256xf32>
    %26 = vector.multi_reduction <add>, %25, %cst_11 [0] : vector<8x256xf32> to vector<256xf32>
    %27 = vector.shape_cast %26 : vector<256xf32> to vector<1x256xf32>
    %28 = vector.extract_strided_slice %6 {offsets = [8, 0], sizes = [8, 256], strides = [1, 1]} : vector<80x256xf32> to vector<8x256xf32>
    %29 = arith.mulf %28, %23 : vector<8x256xf32>
    %cst_12 = arith.constant dense<0.000000e+00> : vector<256xf32>
    %30 = vector.multi_reduction <add>, %29, %cst_12 [0] : vector<8x256xf32> to vector<256xf32>
    %31 = vector.shape_cast %30 : vector<256xf32> to vector<1x256xf32>
    %cst_13 = arith.constant -7.000000e+00 : f32
    %32 = vector.broadcast %cst_13 : f32 to vector<1x256xf32>
    %33 = arith.maximumf %31, %32 : vector<1x256xf32>
    %34 = math.exp %33 : vector<1x256xf32>
    %35 = vector.extract_strided_slice %6 {offsets = [16, 0], sizes = [8, 256], strides = [1, 1]} : vector<80x256xf32> to vector<8x256xf32>
    %36 = arith.mulf %35, %23 : vector<8x256xf32>
    %cst_14 = arith.constant dense<0.000000e+00> : vector<256xf32>
    %37 = vector.multi_reduction <add>, %36, %cst_14 [0] : vector<8x256xf32> to vector<256xf32>
    %38 = vector.shape_cast %37 : vector<256xf32> to vector<1x256xf32>
    %39 = vector.extract_strided_slice %6 {offsets = [24, 0], sizes = [8, 256], strides = [1, 1]} : vector<80x256xf32> to vector<8x256xf32>
    %40 = arith.mulf %39, %23 : vector<8x256xf32>
    %cst_15 = arith.constant dense<0.000000e+00> : vector<256xf32>
    %41 = vector.multi_reduction <add>, %40, %cst_15 [0] : vector<8x256xf32> to vector<256xf32>
    %42 = vector.shape_cast %41 : vector<256xf32> to vector<1x256xf32>
    %cst_16 = arith.constant -7.000000e+00 : f32
    %43 = vector.broadcast %cst_16 : f32 to vector<1x256xf32>
    %44 = arith.maximumf %42, %43 : vector<1x256xf32>
    %45 = math.exp %44 : vector<1x256xf32>
    %46 = vector.extract_strided_slice %6 {offsets = [32, 0], sizes = [8, 256], strides = [1, 1]} : vector<80x256xf32> to vector<8x256xf32>
    %47 = arith.mulf %46, %23 : vector<8x256xf32>
    %cst_17 = arith.constant dense<0.000000e+00> : vector<256xf32>
    %48 = vector.multi_reduction <add>, %47, %cst_17 [0] : vector<8x256xf32> to vector<256xf32>
    %49 = vector.shape_cast %48 : vector<256xf32> to vector<1x256xf32>
    %50 = math.tanh %49 : vector<1x256xf32>
    %51 = vector.extract_strided_slice %6 {offsets = [40, 0], sizes = [8, 256], strides = [1, 1]} : vector<80x256xf32> to vector<8x256xf32>
    %52 = arith.mulf %51, %23 : vector<8x256xf32>
    %cst_18 = arith.constant dense<0.000000e+00> : vector<256xf32>
    %53 = vector.multi_reduction <add>, %52, %cst_18 [0] : vector<8x256xf32> to vector<256xf32>
    %54 = vector.shape_cast %53 : vector<256xf32> to vector<1x256xf32>
    %55 = vector.extract_strided_slice %6 {offsets = [48, 0], sizes = [8, 256], strides = [1, 1]} : vector<80x256xf32> to vector<8x256xf32>
    %56 = arith.mulf %55, %23 : vector<8x256xf32>
    %cst_19 = arith.constant dense<0.000000e+00> : vector<256xf32>
    %57 = vector.multi_reduction <add>, %56, %cst_19 [0] : vector<8x256xf32> to vector<256xf32>
    %58 = vector.shape_cast %57 : vector<256xf32> to vector<1x256xf32>
    %cst_20 = arith.constant -7.000000e+00 : f32
    %59 = vector.broadcast %cst_20 : f32 to vector<1x256xf32>
    %60 = arith.maximumf %58, %59 : vector<1x256xf32>
    %61 = math.exp %60 : vector<1x256xf32>
    %62 = vector.extract_strided_slice %6 {offsets = [56, 0], sizes = [8, 256], strides = [1, 1]} : vector<80x256xf32> to vector<8x256xf32>
    %63 = arith.mulf %62, %23 : vector<8x256xf32>
    %cst_21 = arith.constant dense<0.000000e+00> : vector<256xf32>
    %64 = vector.multi_reduction <add>, %63, %cst_21 [0] : vector<8x256xf32> to vector<256xf32>
    %65 = vector.shape_cast %64 : vector<256xf32> to vector<1x256xf32>
    %66 = math.tanh %65 : vector<1x256xf32>
    %67 = vector.extract_strided_slice %6 {offsets = [64, 0], sizes = [8, 256], strides = [1, 1]} : vector<80x256xf32> to vector<8x256xf32>
    %68 = arith.mulf %67, %23 : vector<8x256xf32>
    %cst_22 = arith.constant dense<0.000000e+00> : vector<256xf32>
    %69 = vector.multi_reduction <add>, %68, %cst_22 [0] : vector<8x256xf32> to vector<256xf32>
    %70 = vector.shape_cast %69 : vector<256xf32> to vector<1x256xf32>
    %71 = math.tanh %70 : vector<1x256xf32>
    %72 = arith.mulf %50, %27 : vector<1x256xf32>
    %73 = arith.addf %38, %72 : vector<1x256xf32>
    %74 = arith.mulf %66, %27 : vector<1x256xf32>
    %75 = arith.addf %54, %74 : vector<1x256xf32>
    %76 = arith.mulf %71, %73 : vector<1x256xf32>
    %77 = arith.addf %75, %76 : vector<1x256xf32>
    %c0_23 = arith.constant 0 : index
    %c0_24 = arith.constant 0 : index
    %c0_25 = arith.constant 0 : index
    %78 = vector.load %arg6[%c0_23, %c0_24, %c0_25] : memref<1x3x256xf32, #tpu.memory_space<vmem>>, vector<1x3x256xf32>
    %79 = vector.shape_cast %78 : vector<1x3x256xf32> to vector<3x256xf32>
    %80 = vector.extract_strided_slice %79 {offsets = [0, 0], sizes = [1, 256], strides = [1, 1]} : vector<3x256xf32> to vector<1x256xf32>
    %81 = arith.mulf %34, %80 : vector<1x256xf32>
    %82 = arith.addf %27, %81 : vector<1x256xf32>
    %83 = vector.extract_strided_slice %79 {offsets = [1, 0], sizes = [1, 256], strides = [1, 1]} : vector<3x256xf32> to vector<1x256xf32>
    %84 = arith.mulf %45, %83 : vector<1x256xf32>
    %85 = arith.addf %73, %84 : vector<1x256xf32>
    %86 = vector.extract_strided_slice %79 {offsets = [2, 0], sizes = [1, 256], strides = [1, 1]} : vector<3x256xf32> to vector<1x256xf32>
    %87 = arith.mulf %61, %86 : vector<1x256xf32>
    %88 = arith.addf %77, %87 : vector<1x256xf32>
    %89 = tpu.concatenate %82, %85, %88 in 0 : vector<1x256xf32>, vector<1x256xf32>, vector<1x256xf32> -> vector<3x256xf32>
    %cst_26 = arith.constant -1.000000e+00 : f32
    %cst_27 = arith.constant 1.000000e+00 : f32
    %90 = vector.broadcast %cst_26 : f32 to vector<3x256xf32>
    %91 = arith.maximumf %90, %89 : vector<3x256xf32>
    %92 = vector.broadcast %cst_27 : f32 to vector<3x256xf32>
    %93 = arith.minimumf %92, %91 : vector<3x256xf32>
    %c0_28 = arith.constant 0 : index
    %c0_29 = arith.constant 0 : index
    %c0_30 = arith.constant 0 : index
    %94 = vector.load %arg7[%c0_28, %c0_29, %c0_30] : memref<1x3x256xf32, #tpu.memory_space<vmem>>, vector<1x3x256xf32>
    %95 = vector.shape_cast %94 : vector<1x3x256xf32> to vector<3x256xf32>
    %96 = vector.shape_cast %93 : vector<3x256xf32> to vector<1x3x256xf32>
    tpu.vector_store %arg7[%c0_28, %c0_29, %c0_30], %96 {strides = array<i32>} : memref<1x3x256xf32, #tpu.memory_space<vmem>>, vector<1x3x256xf32>,
    return
  }
  func.func @transform_0(%arg0: i32, %arg1: i32) -> (i32, i32, i32) {
    %c0_i32 = arith.constant 0 : i32
    %c0_i32_0 = arith.constant 0 : i32
    return %arg0, %c0_i32, %arg1 : i32, i32, i32
  }
  func.func @transform_1(%arg0: i32, %arg1: i32) -> (i32, i32) {
    %c0_i32 = arith.constant 0 : i32
    %c0_i32_0 = arith.constant 0 : i32
    %c0_i32_1 = arith.constant 0 : i32
    return %c0_i32, %c0_i32_0 : i32, i32
  }
  func.func @transform_2(%arg0: i32, %arg1: i32) -> (i32, i32) {
    %c0_i32 = arith.constant 0 : i32
    %c0_i32_0 = arith.constant 0 : i32
    %c0_i32_1 = arith.constant 0 : i32
    return %c0_i32, %c0_i32_0 : i32, i32
  }
  func.func @transform_3(%arg0: i32, %arg1: i32) -> (i32, i32, i32) {
    %c0_i32 = arith.constant 0 : i32
    %c0_i32_0 = arith.constant 0 : i32
    return %arg0, %c0_i32, %arg1 : i32, i32, i32
  }
  func.func @transform_4(%arg0: i32, %arg1: i32) -> (i32, i32, i32) {
    %c0_i32 = arith.constant 0 : i32
    %c0_i32_0 = arith.constant 0 : i32
    return %arg0, %c0_i32, %arg1 : i32, i32, i32
  }
  func.func @transform_5(%arg0: i32, %arg1: i32) -> (i32, i32, i32) {
    %c0_i32 = arith.constant 0 : i32
    %c0_i32_0 = arith.constant 0 : i32
    return %arg0, %c0_i32, %arg1 : i32, i32, i32
  }
}

</mosaic_0001>

<bundles_post_ra>
// kernel: tpu_custom_call.1
= control target key start
LH: loop header
LB: loop body
LE: loop exit
PB: predicated region body
PF: predicated region fallthrough
CT: control target
= control target key end

     0   :  { %s1117_s18 = smov 0   ;;  %s1119_s19 = smov 0   ;;  %s1375_s0 = inlined_call_operand.vmem [shape: bf16[2,32,256], index: 0, kind: input, shape index: {}]   ;;  %s1376_s1 = inlined_call_operand.vmem [shape: bf16[80,32], index: 1, kind: input, shape index: {}]   ;;  %s1377_s2 = inlined_call_operand.vmem [shape: f32[80,1], index: 2, kind: input, shape index: {}]   ;;  %s1378_s3 = inlined_call_operand.vmem [shape: f32[2,8,256], index: 3, kind: input, shape index: {}]   ;;  %s1379_s4 = inlined_call_operand.vmem [shape: f32[2,3,256], index: 4, kind: input, shape index: {}]   ;;  %s1380_s5 = inlined_call_operand.vmem [shape: f32[2,3,256], index: 5, kind: output, shape index: {}]  }
   0x1   :  { %s1121_s20 = smov 0  }
   0x2 LB: > { %s27_s21 = sadd.s32 1, %s1079_s19  ;;  %p961_p0 = scmp.ge.s32.totalorder %s1083_s20, 1  ;;  %s1083_s20 = sphi %s1121_s20, %s15_s20   ;;  %s1079_s19 = sphi %s1119_s19, %s1382_s19   ;;  %s1075_s18 = sphi %s1117_s18, %s1381_s18  }
   0x3   : > { %p29_p1 = scmp.ge.s32.totalorder %s27_s21, 2  ;;  %p242_p2 = scmp.lt.s32.totalorder %s1083_s20, 3 }
   0x5   : > { %s1384_s21 = smov (%p29_p1, %s27_s21), 0  ;;  %p243_p3 = pnand %p961_p0, %p242_p2 }
   0x6   : > { %p297_p4 = scmp.lt.s32.totalorder (!%p243_p3), %s1075_s18, 1  ;;  %v1085_v0 = vmov (!%p243_p3), 0   ;;  %v360_v1 = vld [vmem:[%s1377_s2 + $0x48] sm:$0xff] (!%p243_p3)  ;;  %v354_v2 = vld [vmem:[%s1377_s2 + $0x18] sm:$0xff] (!%p243_p3)  ;;  %v355_v7 = vld [vmem:[%s1377_s2 + $0x20] sm:$0xff] (!%p243_p3)  ;;  %vm456_vm0 = vcmask (!%p243_p3), 261120   ;;  %v559_v54 = vlaneseq (!%p243_p3) }
   0x7   : > { %246 = sbr.rel (%p243_p3) target bundleno = 354 (0x162), region = 40  ;;  %504 = vmatprep.mubr.bf16.mxu0 (!%p243_p3), %v1085_v0  ;;  %534 = vmatprep.mubr.bf16.mxu1 (!%p243_p3), %v1085_v0  ;;  %v357_v8 = vld [vmem:[%s1377_s2 + $0x30] sm:$0xff] (!%p243_p3)  ;;  %v1032_v9 = vld [vmem:[%s1376_s1] sm:$0xff] (!%p243_p3)   ;;  %v1033_v10 = vld [vmem:[%s1376_s1 + $0x18] sm:$0xff] (!%p243_p3)   ;;  %vm819_vm11 = vcmask (!%p243_p3), 1040384   ;;  %vm822_vm12 = vcmask (!%p243_p3), 1041408  }
   0x8   : > { %1024 = vset.pattern.permute.xlu0 (!%p243_p3), %v1085_v0  ;;  %1025 = vset.pattern.permute.xlu1 (!%p243_p3), %v1085_v0  ;;  %v358_v11 = vld [vmem:[%s1377_s2 + $0x38] sm:$0xff] (!%p243_p3)  ;;  %v352_v12 = vld [vmem:[%s1377_s2 + $0x8] sm:$0xff] (!%p243_p3)  ;;  %v359_v13 = vld [vmem:[%s1377_s2 + $0x40] sm:$0xff] (!%p243_p3)  ;;  %v1235_v59 = vshrl.u32 (!%p243_p3), %v559_v54, 7 }
   0x9   : > { %408 = vperm.xlu0 (!%p243_p3), %1024, %v360_v1   ;;  %378 = vperm.xlu1 (!%p243_p3), %1025, %v354_v2   ;;  %v351_v14 = vld [vmem:[%s1377_s2] sm:$0xff] (!%p243_p3)  ;;  %v1034_v15 = vld [vmem:[%s1376_s1 + $0x8] sm:$0xff] (!%p243_p3)   ;;  %v353_v17 = vld [vmem:[%s1377_s2 + $0x10] sm:$0xff] (!%p243_p3) }
   0xa   : > { %v1035_v16 = vld [vmem:[%s1376_s1 + $0x20] sm:$0xff] (!%p243_p3)   ;;  %v356_v18 = vld [vmem:[%s1377_s2 + $0x28] sm:$0xff] (!%p243_p3)  ;;  %v1036_v19 = vld [vmem:[%s1376_s1 + $0x10] sm:$0xff] (!%p243_p3)  }
   0xd   : > { %383 = vperm.xlu0 (!%p243_p3), %1024, %v355_v7   ;;  %393 = vperm.xlu1 (!%p243_p3), %1025, %v357_v8  }
   0xe   : > { %s1386_s18 = smov (!%p297_p4, %s1075_s18), 1 }
   0xf   : > { %s990_s22 = sshll.u32 %s1386_s18, 5  ;;  %s991_s10 = sshll.u32 %s1386_s18, 4 }
  0x10   : > { %s304_s25 = scalar_lea.vmem %s1375_s0, %s990_s22  ;;  %s314_s13 = scalar_lea.vmem %s1378_s3, %s991_s10 }
  0x11   : > { %v1026_v3 = vld [vmem:[%s304_s25 + $0x4] ss:$8 sps:$4 sm:$0xff]   ;;  %v1028_v4 = vld [vmem:[%s304_s25] ss:$8 sps:$4 sm:$0xff]   ;;  %v1029_v5 = vld [vmem:[%s304_s25 + $0x14] ss:$8 sps:$4 sm:$0xff]   ;;  %398 = vperm.xlu0 %1024, %v358_v11   ;;  %368 = vperm.xlu1 %1025, %v352_v12  }
  0x12   : > { %472 = vmatprep.subr.bf16.mxu0 %v1026_v3  ;;  %994 = vmatprep.subr.bf16.mxu1 %v1026_v3  ;;  %v1031_v6 = vld [vmem:[%s304_s25 + $0x10] ss:$8 sps:$4 sm:$0xff]   ;;  %v555_v34 = vld [vmem:[%s314_s13] sm:$0xff]  ;;  %v556_v38 = vld [vmem:[%s314_s13 + $0x8] sm:$0xff]  ;;  %s992_s14 = sshll.u32 %s1386_s18, 3  ;;  %v781_v11 = vsub.s32 1, %v1235_v59 }
  0x13   : > { %473 = vmatpush1.bf16.msra.mxu0 %v1028_v4  ;;  %996 = vmatpush1.bf16.msra.mxu1 %v1028_v4  ;;  %s324_s17 = scalar_lea.vmem %s1379_s4, %s992_s14  ;;  %s334_s24 = scalar_lea.vmem %s1380_s5, %s992_s14 }
  0x14   : > { %474 = vmatprep.subr.bf16.mxu0 %v1029_v5  ;;  %995 = vmatprep.subr.bf16.mxu1 %v1029_v5  ;;  %v1251_v12 = vld [vmem:[%s324_s17] sm:$0x77] }
  0x15   : > { %403 = vperm.xlu0 %1024, %v359_v13   ;;  %363 = vperm.xlu1 %1025, %v351_v14  }
  0x17   : > { %475 = vmatpush1.bf16.msra.mxu0 %v1031_v6  ;;  %997 = vmatpush1.bf16.msra.mxu1 %v1031_v6 }
  0x19   : > { %373 = vperm.xlu0 %1024, %v353_v17   ;;  %388 = vperm.xlu1 %1025, %v356_v18   ;;  %v785_v17 = vsub.s32 5, %v1235_v59 }
  0x1a   : > { %979 = vmatmul.mubr.msk.bf16.vlgmr.msra.gmra.mrb[0].mxu0 %vm456_vm0, %v1032_v9  ;;  %982 = vmatmul.mubr.msk.bf16.vlgmr.msra.gmra.mrb[0].mxu1 %vm456_vm0, %v1033_v10  ;;  %v767_v10 = vsub.s32 0, %v1235_v59 }
  0x1b   : > { %514 = vmatprep.mubr.bf16.mxu0 %v1085_v0  ;;  %544 = vmatprep.mubr.bf16.mxu1 %v1085_v0 }
  0x22   : > { %980 = vmatmul.mubr.msk.bf16.gmra.mrb[4].mxu0 %vm456_vm0, %v1034_v15  ;;  %983 = vmatmul.mubr.msk.bf16.gmra.mrb[4].mxu1 %vm456_vm0, %v1035_v16  ;;  %v771_v16 = vsub.s32 4, %v1235_v59 }
  0x23   : > { %524 = vmatprep.mubr.bf16.mxu0 %v1085_v0 }
  0x2a   : > { %981 = vmatmul.mubr.msk.bf16.gmra.mrb[8].mxu0 %vm456_vm0, %v1036_v19 }
  0x88   : > { %v409_v28 = vpop.permute.xlu0 %408  ;;  %v1227_v48 = vpop.permute.xlu1 %378 }
  0x8c   : > { %v1231_v51 = vpop.permute.xlu0 %383  ;;  %v394_v61 = vpop.permute.xlu1 %393 }
  0x90   : > { %v1237_v62 = vpop.permute.xlu0 %398  ;;  %v369_v4 = vpop.permute.xlu1 %368 }
  0x94   : > { %v1247_v6 = vpop.permute.xlu0 %403  ;;  %v364_v14 = vpop.permute.xlu1 %363 }
  0x98   : > { %v374_v19 = vpop.permute.xlu0 %373 }
  0xed   : > { %v1191_v20 = vpop.f32.mrb[0].mxu1  ;;  %v1193_v21 = vpop.f32.mrb[0].mxu0 }
  0xee   : > { %v1195_v22 = vpop.f32.mrb[1].mxu1  ;;  %v1197_v23 = vpop.f32.mrb[1].mxu0 }
  0xef   : > { %v1199_v24 = vpop.f32.mrb[2].mxu1  ;;  %v1201_v25 = vpop.f32.mrb[2].mxu0 }
  0xf0   : > { %v1203_v26 = vpop.f32.mrb[3].mxu1  ;;  %v1205_v27 = vpop.f32.mrb[3].mxu0 }
  0xf5   : > { %v1211_v29 = vpop.f32.mrb[4].mxu1  ;;  %v1213_v30 = vpop.f32.mrb[4].mxu0 }
  0xf6   : > { %v1215_v31 = vpop.f32.mrb[5].mxu1  ;;  %v1217_v32 = vpop.f32.mrb[5].mxu0 }
  0xf7   : > { %v550_v33 = vpop.f32.mrb[6].mxu1  ;;  %v1219_v35 = vpop.f32.mrb[6].mxu0 }
  0xf8   : > { %v551_v36 = vadd.f32 %v550_v33, %v409_v28  ;;  %v552_v37 = vpop.f32.mrb[7].mxu1  ;;  %v1221_v39 = vpop.f32.mrb[7].mxu0  ;;  %v1256_v33 = vrot.slane %v1251_v12, %v767_v10 }
  0xf9   : > { %v553_v40 = vadd.f32 %v552_v37, %v409_v28  ;;  %v1265_v37 = vadd.f32 %v1195_v22, %v394_v61 }
  0xfa   : > { %v557_v41 = vadd.f32 %v555_v34, %v551_v36  ;;  %v1259_v34 = vrot.slane %v1251_v12, %v781_v11  ;;  %v1262_v36 = vadd.f32 %v1191_v20, %v394_v61  ;;  %v513_v20 = vadd.f32 %v1205_v27, %v369_v4 }
  0xfb   : > { %v558_v42 = vadd.f32 %v556_v38, %v553_v40  ;;  %v507_v40 = vadd.f32 %v1193_v21, %v364_v14  ;;  %v521_v21 = vadd.f32 %v1219_v35, %v1227_v48 }
  0xfc   : > { %v561_v43 = vrot.slane %v557_v41, 4 }
  0xfd   : > { %v567_v44 = vrot.slane %v558_v42, 4  ;;  %v1223_v45 = vpop.f32.mrb[8].mxu0 }
  0xfe   : > { %v562_v46 = vmax.f32 %v557_v41, %v561_v43  ;;  %v1225_v47 = vpop.f32.mrb[9].mxu0  ;;  %v509_v43 = vadd.f32 %v1197_v23, %v364_v14  ;;  %v523_v23 = vadd.f32 %v1221_v39, %v1227_v48  ;;  %v1299_v39 = vadd.f32 %v1211_v29, %v1247_v6 }
  0xff   : > { %v568_v49 = vmax.f32 %v558_v42, %v567_v44  ;;  %v1229_v50 = vpop.f32.mrb[10].mxu0  ;;  %v519_v29 = vadd.f32 %v1217_v32, %v374_v19 }
 0x100   : > { %v563_v52 = vrot.slane %v562_v46, 2  ;;  %v1233_v53 = vpop.f32.mrb[11].mxu0 }
 0x101   : > { %v569_v55 = vrot.slane %v568_v49, 2 }
 0x102   : > { %v564_v56 = vmax.f32 %v562_v46, %v563_v52  ;;  %v517_v46 = vadd.f32 %v1213_v30, %v374_v19 }
 0x103   : > { %v570_v57 = vmax.f32 %v568_v49, %v569_v55  ;;  %v1086_v49 = vmov 0.0  }
 0x104   : > { %v565_v58 = vrot.slane %v564_v56, 1 }
 0x105   : > { %v571_v60 = vrot.slane %v570_v57, 1 }
 0x106   : > { %v566_v63 = vmax.f32 %v564_v56, %v565_v58 }
 0x107   : > { %v572_v0 = vmax.f32 %v570_v57, %v571_v60 }
 0x108   : > { %vm573_vm1 = vcmp.ge.f32.partialorder %v557_v41, %v566_v63  ;;  %v1270_v41 = vadd.f32 %v1199_v24, %v1237_v62  ;;  %v527_v24 = vadd.f32 %v1223_v45, %v1231_v51 }
 0x109   : > { %v575_v1 = vsel %vm573_vm1, %v1235_v59, 8  ;;  %vm574_vm2 = vcmp.ge.f32.partialorder %v558_v42, %v572_v0  ;;  %v511_v42 = vadd.f32 %v1201_v25, %v369_v4  ;;  %v529_v25 = vadd.f32 %v1225_v47, %v1231_v51 }
 0x10a   : > { %v577_v2 = vrot.slane %v575_v1, 4  ;;  %v576_v3 = vsel %vm574_vm2, %v1235_v59, 8 }
 0x10b   : > { %v586_v5 = vrot.slane %v576_v3, 4 }
 0x10c   : > { %vm578_vm3 = vcmp.lt.s32.totalorder %v575_v1, %v577_v2 }
 0x10d   : > { %v579_v7 = vsel %vm578_vm3, %v575_v1, %v577_v2  ;;  %vm587_vm4 = vcmp.lt.s32.totalorder %v576_v3, %v586_v5 }
 0x10e   : > { %v580_v8 = vrot.slane %v579_v7, 2  ;;  %v588_v9 = vsel %vm587_vm4, %v576_v3, %v586_v5 }
 0x10f   : > { %v589_v13 = vrot.slane %v588_v9, 2 }
 0x110   : > { %vm581_vm5 = vcmp.lt.s32.totalorder %v579_v7, %v580_v8 }
 0x111   : > { %v582_v15 = vsel %vm581_vm5, %v579_v7, %v580_v8  ;;  %vm590_vm6 = vcmp.lt.s32.totalorder %v588_v9, %v589_v13 }
 0x112   : > { %v583_v18 = vrot.slane %v582_v15, 1  ;;  %v591_v28 = vsel %vm590_vm6, %v588_v9, %v589_v13 }
 0x113   : > { %v592_v38 = vrot.slane %v591_v28, 1 }
 0x114   : > { %vm584_vm7 = vcmp.lt.s32.totalorder %v582_v15, %v583_v18 }
 0x115   : > { %v585_v44 = vsel %vm584_vm7, %v582_v15, %v583_v18  ;;  %vm593_vm8 = vcmp.lt.s32.totalorder %v591_v28, %v592_v38 }
 0x116   : > { %vm595_vm9 = vcmp.eq.s32.totalorder %v1235_v59, %v585_v44  ;;  %v594_v22 = vsel %vm593_vm8, %v591_v28, %v592_v38  ;;  %v389_v28 = vpop.permute.xlu1 %388 }
 0x117   : > { %v1281_v52 = vsel %vm595_vm9, 1.0, %v1086_v49  ;;  %vm596_vm10 = vcmp.eq.s32.totalorder %v1235_v59, %v594_v22  ;;  %v531_v32 = vadd.f32 %v1229_v50, %v389_v28 }
 0x118   : > { %v635_v27 = vmul.f32 %v1281_v52, %v517_v46  ;;  %v1289_v30 = vsel %vm596_vm10, 1.0, %v1086_v49  ;;  %v649_v35 = vmul.f32 %v1281_v52, %v521_v21  ;;  %v669_v54 = vmul.f32 %v1281_v52, %v527_v24 }
 0x119   : > { %v650_v45 = vmul.f32 %v1289_v30, %v523_v23  ;;  %v670_v55 = vmul.f32 %v1289_v30, %v529_v25  ;;  %v615_v56 = vmul.f32 %v1281_v52, %v511_v42  ;;  %v616_v57 = vmul.f32 %v1289_v30, %v513_v20 }
 0x11a   : > { %v651_v47 = vrot.slane %v649_v35, 4  ;;  %v671_v48 = vrot.slane %v669_v54, 4  ;;  %v601_v51 = vmul.f32 %v1281_v52, %v507_v40  ;;  %v637_v0 = vrot.slane %v635_v27, 4 }
 0x11b   : > { %v657_v58 = vrot.slane %v650_v45, 4  ;;  %v677_v60 = vrot.slane %v670_v55, 4  ;;  %v617_v61 = vrot.slane %v615_v56, 4  ;;  %v623_v63 = vrot.slane %v616_v57, 4 }
 0x11c   : > { %v652_v1 = vadd.f32 %v651_v47, %v649_v35  ;;  %v672_v2 = vadd.f32 %v671_v48, %v669_v54  ;;  %v602_v3 = vmul.f32 %v1289_v30, %v509_v43  ;;  %v603_v11 = vrot.slane %v601_v51, 4 }
 0x11d   : > { %v658_v4 = vadd.f32 %v657_v58, %v650_v45  ;;  %v678_v5 = vadd.f32 %v677_v60, %v670_v55  ;;  %v618_v7 = vadd.f32 %v617_v61, %v615_v56  ;;  %v624_v8 = vadd.f32 %v623_v63, %v616_v57 }
 0x11e   : > { %v653_v9 = vrot.slane %v652_v1, 2  ;;  %v673_v10 = vrot.slane %v672_v2, 2  ;;  %v638_v38 = vadd.f32 %v637_v0, %v635_v27  ;;  %v604_v44 = vadd.f32 %v603_v11, %v601_v51 }
 0x11f   : > { %v659_v13 = vrot.slane %v658_v4, 2  ;;  %v679_v14 = vrot.slane %v678_v5, 2  ;;  %v619_v15 = vrot.slane %v618_v7, 2  ;;  %v625_v18 = vrot.slane %v624_v8, 2 }
 0x120   : > { %v654_v40 = vadd.f32 %v653_v9, %v652_v1  ;;  %v674_v42 = vadd.f32 %v673_v10, %v672_v2  ;;  %v605_v49 = vrot.slane %v604_v44, 2  ;;  %v639_v54 = vrot.slane %v638_v38, 2 }
 0x121   : > { %v660_v46 = vadd.f32 %v659_v13, %v658_v4  ;;  %v680_v43 = vadd.f32 %v679_v14, %v678_v5  ;;  %v620_v20 = vadd.f32 %v619_v15, %v618_v7  ;;  %v626_v22 = vadd.f32 %v625_v18, %v624_v8 }
 0x122   : > { %v655_v21 = vrot.slane %v654_v40, 1  ;;  %v675_v24 = vrot.slane %v674_v42, 1  ;;  %v533_v27 = vadd.f32 %v1233_v53, %v389_v28  ;;  %v606_v58 = vadd.f32 %v605_v49, %v604_v44 }
 0x123   : > { %v661_v19 = vrot.slane %v660_v46, 1  ;;  %v681_v23 = vrot.slane %v680_v43, 1  ;;  %v621_v25 = vrot.slane %v620_v20, 1  ;;  %v627_v35 = vrot.slane %v626_v22, 1 }
 0x124   : > { %v656_v45 = vadd.f32 %v655_v21, %v654_v40  ;;  %v676_v55 = vadd.f32 %v675_v24, %v674_v42  ;;  %v609_v60 = vrot.slane %v602_v3, 4  ;;  %v640_v0 = vadd.f32 %v639_v54, %v638_v38 }
 0x125   : > { %v662_v56 = vadd.f32 %v661_v19, %v660_v46  ;;  %v682_v57 = vadd.f32 %v681_v23, %v680_v43  ;;  %v622_v47 = vadd.f32 %v621_v25, %v620_v20  ;;  %v628_v48 = vadd.f32 %v627_v35, %v626_v22 }
 0x126   : > { %v663_v51 = vmax.f32 %v656_v45, -7.0  ;;  %1037 = vtanh.f32 %v676_v55  ;;  %v610_v2 = vadd.f32 %v609_v60, %v602_v3  ;;  %v636_v4 = vmul.f32 %v1289_v30, %v519_v29 }
 0x127   : > { %v664_v61 = vmax.f32 %v662_v56, -7.0  ;;  %1039 = vtanh.f32 %v682_v57  ;;  %v629_v50 = vmax.f32 %v622_v47, -7.0  ;;  %v630_v63 = vmax.f32 %v628_v48, -7.0 }
 0x128   : > { %v665_v1 = vmul.f32 1.442695, %v663_v51  ;;  %v685_v8 = vmul.f32 %v1281_v52, %v531_v32  ;;  %v611_v9 = vrot.slane %v610_v2, 2  ;;  %v643_v10 = vrot.slane %v636_v4, 4 }
 0x129   : > { %v667_v5 = vmul.f32 1.442695, %v664_v61  ;;  %v631_v7 = vmul.f32 1.442695, %v629_v50  ;;  %v633_v53 = vmul.f32 1.442695, %v630_v63  ;;  %v699_v11 = vmul.f32 %v1281_v52, %v1262_v36 }
 0x12a   : > { %1041 = vpow2.f32 %v665_v1  ;;  %v607_v13 = vrot.slane %v606_v58, 1  ;;  %v719_v14 = vmul.f32 %v1281_v52, %v1270_v41  ;;  %v735_v3 = vmul.f32 %v1281_v52, %v1299_v39 }
 0x12b   : > { %1043 = vpow2.f32 %v667_v5  ;;  %v612_v29 = vadd.f32 %v611_v9, %v610_v2  ;;  %v644_v15 = vadd.f32 %v643_v10, %v636_v4  ;;  %v701_v18 = vrot.slane %v699_v11, 4 }
 0x12c   : > { %1045 = vpow2.f32 %v631_v7  ;;  %v641_v28 = vrot.slane %v640_v0, 1  ;;  %v721_v38 = vrot.slane %v719_v14, 4  ;;  %v737_v40 = vrot.slane %v735_v3, 4 }
 0x12d   : > { %1047 = vpow2.f32 %v633_v53  ;;  %v613_v42 = vrot.slane %v612_v29, 1  ;;  %v645_v44 = vrot.slane %v644_v15, 2  ;;  %v702_v46 = vadd.f32 %v701_v18, %v699_v11 }
 0x12e   : > { %v1315_v36 = vmul.f32 %v1289_v30, %v533_v27  ;;  %v1317_v43 = vadd.f32 %v607_v13, %v606_v58  ;;  %v722_v41 = vadd.f32 %v721_v38, %v719_v14  ;;  %v738_v20 = vadd.f32 %v737_v40, %v735_v3 }
 0x12f   : > { %v700_v52 = vmul.f32 %v1289_v30, %v1265_v37  ;;  %v1321_v22 = vadd.f32 %v613_v42, %v612_v29  ;;  %v646_v21 = vadd.f32 %v645_v44, %v644_v15  ;;  %v687_v24 = vrot.slane %v685_v8, 4 }
 0x130   : > { %v1038_v39 = vpop.eup %1037  ;;  %v703_v49 = vrot.slane %v702_v46, 2  ;;  %v642_v19 = vadd.f32 %v641_v28, %v640_v0  ;;  %v723_v25 = vrot.slane %v722_v41, 2  ;;  %v739_v35 = vrot.slane %v738_v20, 2 }
 0x131   : > { %v1040_v32 = vpop.eup %1039  ;;  %v751_v23 = vmul.f32 %v1038_v39, %v1317_v43  ;;  %v647_v54 = vrot.slane %v646_v21, 1  ;;  %v786_v37 = vrot.slane %v1251_v12, %v785_v17  ;;  %v772_v56 = vrot.slane %v1251_v12, %v771_v16 }
 0x132   : > { %v752_v45 = vmul.f32 %v1040_v32, %v1321_v22  ;;  %v704_v55 = vadd.f32 %v703_v49, %v702_v46  ;;  %v724_v57 = vadd.f32 %v723_v25, %v722_v41  ;;  %v740_v47 = vadd.f32 %v739_v35, %v738_v20 }
 0x133   : > { %v1328_v27 = vadd.f32 %v751_v23, %v642_v19  ;;  %v543_v51 = vadd.f32 %v1203_v26, %v1237_v62  ;;  %v648_v58 = vadd.f32 %v647_v54, %v646_v21  ;;  %v688_v60 = vadd.f32 %v687_v24, %v685_v8 }
 0x134   : > { %v1042_v48 = vpop.eup %1041  ;;  %v705_v61 = vrot.slane %v704_v55, 1  ;;  %v725_v17 = vrot.slane %v724_v57, 1  ;;  %v741_v0 = vrot.slane %v740_v47, 1  ;;  %v707_v1 = vrot.slane %v700_v52, 4 }
 0x135   : > { %v1044_v50 = vpop.eup %1043  ;;  %v789_v63 = vmul.f32 %v1042_v48, %v1259_v34  ;;  %v549_v4 = vadd.f32 %v1215_v31, %v1247_v6  ;;  %v1338_v16 = vadd.f32 %v752_v45, %v648_v58  ;;  %v689_v11 = vrot.slane %v688_v60, 2 }
 0x136   : > { %v1046_v2 = vpop.eup %1045  ;;  %v790_v5 = vmul.f32 %v1044_v50, %v786_v37  ;;  %v706_v7 = vadd.f32 %v705_v61, %v704_v55  ;;  %v726_v8 = vadd.f32 %v725_v17, %v724_v57  ;;  %v742_v9 = vadd.f32 %v741_v0, %v740_v47 }
 0x137   : > { %v1048_v53 = vpop.eup %1047  ;;  %v775_v26 = vmul.f32 %v1046_v2, %v1256_v33  ;;  %v791_v62 = vadd.f32 %v789_v63, %v1328_v27  ;;  %v708_v31 = vadd.f32 %v707_v1, %v700_v52  ;;  %v720_v28 = vmul.f32 %v1289_v30, %v543_v51 }
 0x138   : > { %v776_v10 = vmul.f32 %v1048_v53, %v772_v56  ;;  %v792_v34 = vadd.f32 %v790_v5, %v1338_v16  ;;  %v713_v13 = vmax.f32 %v706_v7, -7.0  ;;  %1049 = vtanh.f32 %v726_v8 }
 0x139   : > { %v777_v14 = vadd.f32 %v775_v26, %v1317_v43  ;;  %v809_v3 = vrot.slane %v791_v62, 7  ;;  %1051 = vtanh.f32 %v742_v9  ;;  %v709_v18 = vrot.slane %v708_v31, 2 }
 0x13a   : > { %v778_v6 = vadd.f32 %v776_v10, %v1321_v22  ;;  %v810_v29 = vrot.slane %v792_v34, 7  ;;  %v715_v15 = vmul.f32 1.442695, %v713_v13  ;;  %v690_v40 = vadd.f32 %v689_v11, %v688_v60 }
 0x13b   : > { %v820_v33 = vsel %vm819_vm11, %v777_v14, %v809_v3  ;;  %v736_v42 = vmul.f32 %v1289_v30, %v549_v4  ;;  %v710_v44 = vadd.f32 %v709_v18, %v708_v31  ;;  %v727_v46 = vrot.slane %v720_v28, 4 }
 0x13c   : > { %v821_v38 = vsel %vm819_vm11, %v778_v6, %v810_v29  ;;  %1053 = vpow2.f32 %v715_v15  ;;  %v795_v20 = vsub.s32 2, %v1235_v59  ;;  %v691_v21 = vrot.slane %v690_v40, 1 }
 0x13d   : > { %v743_v41 = vrot.slane %v736_v42, 4  ;;  %v711_v52 = vrot.slane %v710_v44, 1  ;;  %v728_v39 = vadd.f32 %v727_v46, %v720_v28  ;;  %v693_v24 = vrot.slane %v1315_v36, 4 }
 0x13e   : > { %v796_v35 = vrot.slane %v1251_v12, %v795_v20  ;;  %v692_v37 = vadd.f32 %v691_v21, %v690_v40  ;;  %v799_v5 = vsub.s32 6, %v1235_v59 }
 0x13f   : > { %v744_v49 = vadd.f32 %v743_v41, %v736_v42  ;;  %v712_v32 = vadd.f32 %v711_v52, %v710_v44  ;;  %v729_v19 = vrot.slane %v728_v39, 2  ;;  %v694_v56 = vadd.f32 %v693_v24, %v1315_v36 }
 0x140   : > { %v800_v8 = vrot.slane %v1251_v12, %v799_v5 }
 0x141   : > { %v745_v23 = vrot.slane %v744_v49, 2  ;;  %v714_v54 = vmax.f32 %v712_v32, -7.0  ;;  %v730_v45 = vadd.f32 %v729_v19, %v728_v39  ;;  %v695_v0 = vrot.slane %v694_v56, 2 }
 0x142   : > { %v1050_v25 = vpop.eup %1049 }
 0x143   : > { %v1052_v30 = vpop.eup %1051  ;;  %v755_v55 = vmul.f32 %v1050_v25, %v1317_v43  ;;  %v746_v57 = vadd.f32 %v745_v23, %v744_v49  ;;  %v731_v48 = vrot.slane %v730_v45, 1  ;;  %v717_v61 = vmul.f32 1.442695, %v714_v54 }
 0x144   : > { %v759_v47 = vmul.f32 %v1052_v30, %v1328_v27  ;;  %v696_v36 = vadd.f32 %v695_v0, %v694_v56 }
 0x145   : > { %v757_v58 = vadd.f32 %v755_v55, %v692_v37  ;;  %v747_v60 = vrot.slane %v746_v57, 1  ;;  %v732_v50 = vadd.f32 %v731_v48, %v730_v45 }
 0x146   : > { %v1054_v51 = vpop.eup %1053  ;;  %v697_v27 = vrot.slane %v696_v36, 1 }
 0x147   : > { %v761_v63 = vadd.f32 %v759_v47, %v757_v58  ;;  %v803_v17 = vmul.f32 %v1054_v51, %v796_v35  ;;  %v748_v1 = vadd.f32 %v747_v60, %v746_v57  ;;  %1055 = vtanh.f32 %v732_v50 }
 0x148   : > { %v698_v26 = vadd.f32 %v697_v27, %v696_v36 }
 0x149   : > { %v805_v2 = vadd.f32 %v803_v17, %v761_v63  ;;  %1057 = vtanh.f32 %v748_v1 }
 0x14a   : > { %1059 = vpow2.f32 %v717_v61 }
 0x14b   : > { %v815_v43 = vrot.slane %v805_v2, 6 }
 0x14d   : > { %v823_v4 = vsel %vm822_vm12, %v820_v33, %v815_v43 }
 0x14e   : > { %v986_v31 = vclamps-f32 %v823_v4, 1.0 }
 0x151   : > { %v1056_v7 = vpop.eup %1055 }
 0x152   : > { %v756_v62 = vmul.f32 %v1056_v7, %v1321_v22 }
 0x153   : > { %v1058_v53 = vpop.eup %1057 }
 0x154   : > { %v1060_v9 = vpop.eup %1059  ;;  %v760_v10 = vmul.f32 %v1058_v53, %v1338_v16  ;;  %v758_v34 = vadd.f32 %v756_v62, %v698_v26 }
 0x155   : > { %v804_v13 = vmul.f32 %v1060_v9, %v800_v8 }
 0x156   : > { %v762_v11 = vadd.f32 %v760_v10, %v758_v34 }
 0x158   : > { %v806_v14 = vadd.f32 %v804_v13, %v762_v11 }
 0x15a   : > { %v816_v3 = vrot.slane %v806_v14, 6 }
 0x15c   : > { %v824_v6 = vsel %vm822_vm12, %v821_v38, %v816_v3 }
 0x15d   : > { %v987_v59 = vclamps-f32 %v824_v6, 1.0 }
 0x15f   : > { %v831_v22 = vcombine.low %v986_v31, %v987_v59 }
 0x161   : > { %833 = vst [vmem:[%s334_s24] sm:$0x77] %v831_v22 }
 0x162 PF: > { %s15_s20 = sadd.s32 1, %s1083_s20   ;;  %s1381_s18 = smov %s1079_s19 }
 0x163   : > { %p12_p5 = scmp.ge.s32.totalorder %s15_s20, 4   ;;  %s1382_s19 = smov %s1384_s21 }
 0x165   :  { %14 = sbr.rel (!%p12_p5) target bundleno = 2 (0x2), region = 76 }

</bundles_post_ra>
